<compile_context>
chip_gen: v7x
topology: tpu7x:2x2x1
jax: 0.10.0
libtpu: 0.0.40
codegen_flags: <defaults>
</compile_context>

<pallas_src>
import jax
import jax.numpy as jnp
from jax.experimental import pallas as pl
from jax.experimental.pallas import tpu as pltpu


_TM_MAX = 512   # batch-lanes per tile (multiple of 128)
_LANES = 128


def _cdiv(a, b):
    return (a + b - 1) // b


def _round_up(n, m):
    return _cdiv(n, m) * m


def critic_kernel(x_ref, w1_ref, b1_ref, w2_ref, b2_ref, w3_ref, b3_ref, o_ref):
    """One batch tile of the Critic forward, transposed orientation.

    x_ref : (K_pad, TM)  bf16  streamed per grid step (batch on lanes)
    w1_ref: (128, K_pad) bf16  resident
    b1_ref: (128, 1)     f32   resident
    w2_ref: (256, 128)   bf16  resident
    b2_ref: (256, 1)     f32   resident
    w3_ref: (256, 1)     f32   resident (fc3 weight as a column)
    b3_ref: (1, 1)       f32   resident
    o_ref : (1, TM)      f32   lane-dense output row
    """
    # ---- fc1 + ReLU: MXU, bf16 operands, f32 accumulation -----------------
    h1 = jnp.dot(w1_ref[...], x_ref[...],
                 preferred_element_type=jnp.float32)           # (128, TM) f32
    h1 = jnp.maximum(h1 + b1_ref[...], 0.0)                    # f32 epilogue

    # ---- fc2 + ReLU: dominant matmul on the MXU ---------------------------
    h2 = jnp.dot(w2_ref[...], h1.astype(jnp.bfloat16),
                 preferred_element_type=jnp.float32)           # (256, TM) f32
    h2 = jnp.maximum(h2 + b2_ref[...], 0.0)                    # f32 epilogue

    # ---- fc3 (N=1): VPU multiply + sublane reduce -> lane-dense row -------
    out = jnp.sum(h2 * w3_ref[...], axis=0, keepdims=True)     # (1, TM)
    o_ref[...] = (out + b3_ref[...]).astype(o_ref.dtype)


def critic_forward(x, params):
    """x: [B, num_states] float32 -> [B, 1] float32."""
    w1, b1, w2, b2, w3, b3 = params   # PyTorch layout: w* = [out, in], b* = [out]
    B, K = x.shape
    H1 = w1.shape[0]                  # 128
    H2 = w2.shape[0]                  # 256

    # Balanced batch tiling: TM multiple of 128 (lane-dense), capped so the
    # f32 intermediates stay small; >= 2 tiles when B is big enough so both
    # v7x TensorCores get work.
    num_tiles = max(1, _cdiv(B, _TM_MAX))
    if B >= 2 * _LANES:
        num_tiles = max(num_tiles, 2)
    TM = _round_up(_cdiv(B, num_tiles), _LANES)
    B_pad = TM * num_tiles

    # Contraction dim of fc1 padded to a bf16-packing-friendly multiple of 16
    # (zero padding -> exact same result).
    K_pad = _round_up(K, 16)

    # x transposed: batch on lanes, features on sublanes.
    xT = x.T.astype(jnp.bfloat16)                               # (K, B)
    xT = jnp.pad(xT, ((0, K_pad - K), (0, B_pad - B)))          # (K_pad, B_pad)

    w1_bf = jnp.pad(w1.astype(jnp.bfloat16), ((0, 0), (0, K_pad - K)))  # (128, K_pad)
    w2_bf = w2.astype(jnp.bfloat16)                             # (256, 128)
    b1_col = b1.reshape(H1, 1).astype(jnp.float32)
    b2_col = b2.reshape(H2, 1).astype(jnp.float32)
    w3_col = w3.reshape(H2, 1).astype(jnp.float32)
    b3_s = b3.reshape(1, 1).astype(jnp.float32)

    def resident(shape):
        return pl.BlockSpec(shape, lambda i: (0, 0))

    out = pl.pallas_call(
        critic_kernel,
        out_shape=jax.ShapeDtypeStruct((1, B_pad), jnp.float32),
        grid=(num_tiles,),
        in_specs=[
            pl.BlockSpec((K_pad, TM), lambda i: (0, i)),  # x tile (streamed)
            resident((H1, K_pad)),                        # w1 (bf16)
            resident((H1, 1)),                            # b1 column
            resident((H1, H2)) if False else resident((H2, H1)),  # w2 (bf16) [256,128]
            resident((H2, 1)),                            # b2 column
            resident((H2, 1)),                            # w3 column
            resident((1, 1)),                             # b3
        ],
        out_specs=pl.BlockSpec((1, TM), lambda i: (0, i)),  # lane-dense row
        compiler_params=pltpu.CompilerParams(
            dimension_semantics=("parallel",)),             # shard tiles on v7x
    )(xT, w1_bf, b1_col, w2_bf, b2_col, w3_col, b3_s)

    return out[0, :B][:, None]                                # (B, 1)


def init_params(key, num_states):
    """Deterministic synthetic parameters in PyTorch nn.Linear layout, f32."""
    k1, k2, k3, k4, k5, k6 = jax.random.split(key, 6)
    scale = 0.05
    w1 = scale * jax.random.normal(k1, (128, num_states), jnp.float32)
    b1 = scale * jax.random.normal(k2, (128,), jnp.float32)
    w2 = scale * jax.random.normal(k3, (256, 128), jnp.float32)
    b2 = scale * jax.random.normal(k4, (256,), jnp.float32)
    w3 = scale * jax.random.normal(k5, (1, 256), jnp.float32)
    b3 = scale * jax.random.normal(k6, (1,), jnp.float32)
    return (w1, b1, w2, b2, w3, b3)


def critic_reference(x, params, emulate_bf16=False):
    """Plain-JAX reference (PyTorch semantics). With emulate_bf16=True it
    mirrors the kernel's bf16 operand rounding (f32 accumulation either way)."""
    w1, b1, w2, b2, w3, b3 = params
    if emulate_bf16:
        x = x.astype(jnp.bfloat16).astype(jnp.float32)
        w1 = w1.astype(jnp.bfloat16).astype(jnp.float32)
        w2 = w2.astype(jnp.bfloat16).astype(jnp.float32)
    h1 = jnp.maximum(x @ w1.T + b1, 0.0)
    if emulate_bf16:
        h1 = h1.astype(jnp.bfloat16).astype(jnp.float32)
    h2 = jnp.maximum(h1 @ w2.T + b2, 0.0)
    return h2 @ w3.T + b3


if __name__ == "__main__":
    key = jax.random.PRNGKey(0)
    kp, kx = jax.random.split(key)

    batch = 2
    num_states = 8

    params = init_params(kp, num_states)
    x = jax.random.normal(kx, (batch, num_states), jnp.float32)

    out = jax.block_until_ready(critic_forward(x, params))

    ref_bf16 = critic_reference(x, params, emulate_bf16=True)
    ref_f32 = critic_reference(x, params, emulate_bf16=False)

    assert out.shape == (batch, 1), out.shape
    # Tight check vs. the bf16-operand-emulating reference (same rounding).
    assert jnp.allclose(out, ref_bf16, atol=1e-3, rtol=1e-3), (out, ref_bf16)
    # Looser check vs. the pure-f32 PyTorch-semantics reference.
    assert jnp.allclose(out, ref_f32, atol=3e-2, rtol=3e-2), (out, ref_f32)

    print("KERNEL_OK")
</pallas_src>

<mosaic_0001>
module attributes {stable_mosaic.version = 11 : i64} {
  func.func @critic_kernel(%arg0: i32, %arg1: memref<16x128xbf16, #tpu.memory_space<vmem>>, %arg2: memref<128x16xbf16, #tpu.memory_space<vmem>>, %arg3: memref<128x1xf32, #tpu.memory_space<vmem>>, %arg4: memref<256x128xbf16, #tpu.memory_space<vmem>>, %arg5: memref<256x1xf32, #tpu.memory_space<vmem>>, %arg6: memref<256x1xf32, #tpu.memory_space<vmem>>, %arg7: memref<1x1xf32, #tpu.memory_space<vmem>>, %arg8: memref<1x128xf32, #tpu.memory_space<vmem>>) attributes {dimension_semantics = [#tpu.dimension_semantics<parallel>], iteration_bounds = array<i64: 1>, scalar_prefetch = 0 : i64, scratch_operands = 0 : i64, tpu.core_type = #tpu.core_type<tc>, window_params = [{transform_indices = @transform_0, window_bounds = array<i64: 16, 128>}, {pipeline_mode = #tpu.pipeline_mode<synchronous>, transform_indices = @transform_1, window_bounds = array<i64: 128, 16>}, {pipeline_mode = #tpu.pipeline_mode<synchronous>, transform_indices = @transform_2, window_bounds = array<i64: 128, 1>}, {pipeline_mode = #tpu.pipeline_mode<synchronous>, transform_indices = @transform_3, window_bounds = array<i64: 256, 128>}, {pipeline_mode = #tpu.pipeline_mode<synchronous>, transform_indices = @transform_4, window_bounds = array<i64: 256, 1>}, {pipeline_mode = #tpu.pipeline_mode<synchronous>, transform_indices = @transform_5, window_bounds = array<i64: 256, 1>}, {pipeline_mode = #tpu.pipeline_mode<synchronous>, transform_indices = @transform_6, window_bounds = array<i64: 1, 1>}, {transform_indices = @transform_7, window_bounds = array<i64: 1, 128>}]} {
    %c0 = arith.constant 0 : index
    %c0_0 = arith.constant 0 : index
    %0 = vector.load %arg2[%c0, %c0_0] : memref<128x16xbf16, #tpu.memory_space<vmem>>, vector<128x16xbf16>
    %c0_1 = arith.constant 0 : index
    %c0_2 = arith.constant 0 : index
    %1 = vector.load %arg1[%c0_1, %c0_2] : memref<16x128xbf16, #tpu.memory_space<vmem>>, vector<16x128xbf16>
    %cst = arith.constant dense<0.000000e+00> : vector<128x128xf32>
    %2 = tpu.matmul %0, %1, %cst {dimension_numbers = #tpu.dot_dimension_numbers<[1], [0], [0], [1], [0, 0, 1, 1], [], []>} : vector<128x16xbf16>, vector<16x128xbf16>, vector<128x128xf32> -> vector<128x128xf32>
    %c0_3 = arith.constant 0 : index
    %c0_4 = arith.constant 0 : index
    %3 = vector.load %arg3[%c0_3, %c0_4] : memref<128x1xf32, #tpu.memory_space<vmem>>, vector<128x1xf32>
    %4 = vector.broadcast %3 : vector<128x1xf32> to vector<128x128xf32>
    %5 = arith.addf %2, %4 : vector<128x128xf32>
    %cst_5 = arith.constant 0.000000e+00 : f32
    %6 = vector.broadcast %cst_5 : f32 to vector<128x128xf32>
    %7 = arith.maximumf %5, %6 : vector<128x128xf32>
    %c0_6 = arith.constant 0 : index
    %c0_7 = arith.constant 0 : index
    %8 = vector.load %arg4[%c0_6, %c0_7] : memref<256x128xbf16, #tpu.memory_space<vmem>>, vector<256x128xbf16>
    %9 = arith.truncf %7 : vector<128x128xf32> to vector<128x128xbf16>
    %cst_8 = arith.constant dense<0.000000e+00> : vector<256x128xf32>
    %10 = tpu.matmul %8, %9, %cst_8 {dimension_numbers = #tpu.dot_dimension_numbers<[1], [0], [0], [1], [0, 0, 1, 1], [], []>} : vector<256x128xbf16>, vector<128x128xbf16>, vector<256x128xf32> -> vector<256x128xf32>
    %c0_9 = arith.constant 0 : index
    %c0_10 = arith.constant 0 : index
    %11 = vector.load %arg5[%c0_9, %c0_10] : memref<256x1xf32, #tpu.memory_space<vmem>>, vector<256x1xf32>
    %12 = vector.broadcast %11 : vector<256x1xf32> to vector<256x128xf32>
    %13 = arith.addf %10, %12 : vector<256x128xf32>
    %cst_11 = arith.constant 0.000000e+00 : f32
    %14 = vector.broadcast %cst_11 : f32 to vector<256x128xf32>
    %15 = arith.maximumf %13, %14 : vector<256x128xf32>
    %c0_12 = arith.constant 0 : index
    %c0_13 = arith.constant 0 : index
    %16 = vector.load %arg6[%c0_12, %c0_13] : memref<256x1xf32, #tpu.memory_space<vmem>>, vector<256x1xf32>
    %17 = vector.broadcast %16 : vector<256x1xf32> to vector<256x128xf32>
    %18 = arith.mulf %15, %17 : vector<256x128xf32>
    %cst_14 = arith.constant dense<0.000000e+00> : vector<128xf32>
    %19 = vector.multi_reduction <add>, %18, %cst_14 [0] : vector<256x128xf32> to vector<128xf32>
    %20 = vector.shape_cast %19 : vector<128xf32> to vector<1x128xf32>
    %c0_15 = arith.constant 0 : index
    %c0_16 = arith.constant 0 : index
    %21 = vector.load %arg7[%c0_15, %c0_16] : memref<1x1xf32, #tpu.memory_space<vmem>>, vector<1x1xf32>
    %22 = vector.broadcast %21 : vector<1x1xf32> to vector<1x128xf32>
    %23 = arith.addf %20, %22 : vector<1x128xf32>
    %c0_17 = arith.constant 0 : index
    %c0_18 = arith.constant 0 : index
    %24 = vector.load %arg8[%c0_17, %c0_18] : memref<1x128xf32, #tpu.memory_space<vmem>>, vector<1x128xf32>
    tpu.vector_store %arg8[%c0_17, %c0_18], %23 {strides = array<i32>} : memref<1x128xf32, #tpu.memory_space<vmem>>, vector<1x128xf32>,
    return
  }
  func.func @transform_0(%arg0: i32) -> (i32, i32) {
    %c0_i32 = arith.constant 0 : i32
    %c0_i32_0 = arith.constant 0 : i32
    return %c0_i32, %arg0 : i32, i32
  }
  func.func @transform_1(%arg0: i32) -> (i32, i32) {
    %c0_i32 = arith.constant 0 : i32
    %c0_i32_0 = arith.constant 0 : i32
    %c0_i32_1 = arith.constant 0 : i32
    return %c0_i32, %c0_i32_0 : i32, i32
  }
  func.func @transform_2(%arg0: i32) -> (i32, i32) {
    %c0_i32 = arith.constant 0 : i32
    %c0_i32_0 = arith.constant 0 : i32
    %c0_i32_1 = arith.constant 0 : i32
    return %c0_i32, %c0_i32_0 : i32, i32
  }
  func.func @transform_3(%arg0: i32) -> (i32, i32) {
    %c0_i32 = arith.constant 0 : i32
    %c0_i32_0 = arith.constant 0 : i32
    %c0_i32_1 = arith.constant 0 : i32
    return %c0_i32, %c0_i32_0 : i32, i32
  }
  func.func @transform_4(%arg0: i32) -> (i32, i32) {
    %c0_i32 = arith.constant 0 : i32
    %c0_i32_0 = arith.constant 0 : i32
    %c0_i32_1 = arith.constant 0 : i32
    return %c0_i32, %c0_i32_0 : i32, i32
  }
  func.func @transform_5(%arg0: i32) -> (i32, i32) {
    %c0_i32 = arith.constant 0 : i32
    %c0_i32_0 = arith.constant 0 : i32
    %c0_i32_1 = arith.constant 0 : i32
    return %c0_i32, %c0_i32_0 : i32, i32
  }
  func.func @transform_6(%arg0: i32) -> (i32, i32) {
    %c0_i32 = arith.constant 0 : i32
    %c0_i32_0 = arith.constant 0 : i32
    %c0_i32_1 = arith.constant 0 : i32
    return %c0_i32, %c0_i32_0 : i32, i32
  }
  func.func @transform_7(%arg0: i32) -> (i32, i32) {
    %c0_i32 = arith.constant 0 : i32
    %c0_i32_0 = arith.constant 0 : i32
    return %c0_i32, %arg0 : i32, i32
  }
}

</mosaic_0001>

<bundles_post_ra>
// kernel: tpu_custom_call.1
= control target key start
LH: loop header
LB: loop body
LE: loop exit
PB: predicated region body
PF: predicated region fallthrough
CT: control target
= control target key end

     0   :  { %s1867_s0 = inlined_call_operand.vmem [shape: bf16[16,128], index: 0, kind: input, shape index: {}]   ;;  %s1868_s1 = inlined_call_operand.vmem [shape: bf16[128,16], index: 1, kind: input, shape index: {}]   ;;  %s1869_s2 = inlined_call_operand.vmem [shape: f32[128,1], index: 2, kind: input, shape index: {}]   ;;  %s1870_s3 = inlined_call_operand.vmem [shape: bf16[256,128], index: 3, kind: input, shape index: {}]   ;;  %s1871_s4 = inlined_call_operand.vmem [shape: f32[256,1], index: 4, kind: input, shape index: {}]   ;;  %s1872_s5 = inlined_call_operand.vmem [shape: f32[256,1], index: 5, kind: input, shape index: {}]   ;;  %s1873_s6 = inlined_call_operand.<no memory space> [shape: f32[1,1], index: 6, kind: input, shape index: {}]   ;;  %s1874_s7 = inlined_call_operand.hbm [shape: f32[1,128], index: 7, kind: output, shape index: {}]  }
   0x1   :  { %v12_v0 = vstv %s1873_s6 }
   0x2   :  { %13 = vst [vmem:[#allocation2] sm:$0x1] %v12_v0 }
   0x3   :  { %v50_v1 = vld [vmem:[%s1869_s2 + $0x10] sm:$0xff]  ;;  %v48_v2 = vld [vmem:[%s1869_s2] sm:$0xff]  ;;  %v1337_v3 = vmov 0   ;;  %v51_v5 = vld [vmem:[%s1869_s2 + $0x18] sm:$0xff]  ;;  %vm190_vm0 = vcmask 130048  }
   0x4   :  { %1287 = vset.pattern.permute.xlu1 %v1337_v3  ;;  %1286 = vset.pattern.permute.xlu0 %v1337_v3  ;;  %v1288_v4 = vld [vmem:[%s1867_s0] sm:$0xff]   ;;  %v49_v6 = vld [vmem:[%s1869_s2 + $0x8] sm:$0xff]  ;;  %v1291_v9 = vld [vmem:[%s1868_s1 + $0x10] sm:$0xff]  }
   0x5   :  { %76 = vperm.xlu1 %1287, %v50_v1   ;;  %66 = vperm.xlu0 %1286, %v48_v2   ;;  %v1289_v7 = vld [vmem:[%s1868_s1] sm:$0xff]   ;;  %v1290_v8 = vld [vmem:[%s1868_s1 + $0x8] sm:$0xff]   ;;  %v55_v12 = vld [vmem:[%s1869_s2 + $0x38] sm:$0xff] }
   0x6   :  { %1202 = vmatprep.subr.bf16.mxu0 %v1288_v4  ;;  %1204 = vmatprep.mubr.msk.bf16.mxu0 %vm190_vm0, %v1289_v7  ;;  %v53_v10 = vld [vmem:[%s1869_s2 + $0x28] sm:$0xff]  ;;  %v52_v11 = vld [vmem:[%s1869_s2 + $0x20] sm:$0xff]  ;;  %v54_v13 = vld [vmem:[%s1869_s2 + $0x30] sm:$0xff] }
   0x7   :  { %1203 = vmatpush3.bf16.msra.mxu0 %v1288_v4  ;;  %v1292_v14 = vld [vmem:[%s1868_s1 + $0x18] sm:$0xff]   ;;  %v1293_v15 = vld [vmem:[%s1868_s1 + $0x20] sm:$0xff]   ;;  %v57_v16 = vld [vmem:[%s1869_s2 + $0x48] sm:$0xff] }
   0x8   :  { %v56_v17 = vld [vmem:[%s1869_s2 + $0x40] sm:$0xff]  ;;  %v59_v18 = vld [vmem:[%s1869_s2 + $0x58] sm:$0xff]  ;;  %v58_v19 = vld [vmem:[%s1869_s2 + $0x50] sm:$0xff] }
   0x9   :  { %81 = vperm.xlu1 %1287, %v51_v5   ;;  %71 = vperm.xlu0 %1286, %v49_v6   ;;  %v1294_v20 = vld [vmem:[%s1868_s1 + $0x28] sm:$0xff]   ;;  %v1295_v21 = vld [vmem:[%s1868_s1 + $0x30] sm:$0xff]   ;;  %v60_v23 = vld [vmem:[%s1869_s2 + $0x60] sm:$0xff] }
   0xa   :  { %1205 = vmatmul.mubr.msk.bf16.vlgmr.msra.gmra.mrb[0].mxu0 %vm190_vm0, %v1290_v8  ;;  %v61_v22 = vld [vmem:[%s1869_s2 + $0x68] sm:$0xff]  ;;  %v63_v24 = vld [vmem:[%s1869_s2 + $0x78] sm:$0xff]  ;;  %v62_v25 = vld [vmem:[%s1869_s2 + $0x70] sm:$0xff] }
   0xb   :  { %1208 = vmatprep.mubr.msk.bf16.mxu0 %vm190_vm0, %v1291_v9  ;;  %v1296_v26 = vld [vmem:[%s1868_s1 + $0x38] sm:$0xff]   ;;  %v369_v27 = vld [vmem:[%s1871_s4 + $0x8] sm:$0xff]  ;;  %v368_v28 = vld [vmem:[%s1871_s4] sm:$0xff] }
   0xc   :  { %v371_v29 = vld [vmem:[%s1871_s4 + $0x18] sm:$0xff]  ;;  %v370_v30 = vld [vmem:[%s1871_s4 + $0x10] sm:$0xff]  ;;  %v373_v31 = vld [vmem:[%s1871_s4 + $0x28] sm:$0xff] }
   0xd   :  { %91 = vperm.xlu1 %1287, %v53_v10   ;;  %86 = vperm.xlu0 %1286, %v52_v11   ;;  %v372_v32 = vld [vmem:[%s1871_s4 + $0x20] sm:$0xff]  ;;  %v375_v33 = vld [vmem:[%s1871_s4 + $0x38] sm:$0xff]  ;;  %v374_v34 = vld [vmem:[%s1871_s4 + $0x30] sm:$0xff] }
  0x11   :  { %101 = vperm.xlu1 %1287, %v55_v12   ;;  %96 = vperm.xlu0 %1286, %v54_v13  }
  0x12   :  { %1209 = vmatmul.mubr.msk.bf16.gmra.mrb[4].mxu0 %vm190_vm0, %v1292_v14 }
  0x13   :  { %1212 = vmatprep.mubr.msk.bf16.mxu0 %vm190_vm0, %v1293_v15 }
  0x15   :  { %111 = vperm.xlu1 %1287, %v57_v16   ;;  %106 = vperm.xlu0 %1286, %v56_v17  }
  0x19   :  { %121 = vperm.xlu1 %1287, %v59_v18   ;;  %116 = vperm.xlu0 %1286, %v58_v19  }
  0x1a   :  { %1213 = vmatmul.mubr.msk.bf16.gmra.mrb[8].mxu0 %vm190_vm0, %v1294_v20 }
  0x1b   :  { %1216 = vmatprep.mubr.msk.bf16.mxu0 %vm190_vm0, %v1295_v21 }
  0x1d   :  { %131 = vperm.xlu1 %1287, %v61_v22   ;;  %126 = vperm.xlu0 %1286, %v60_v23  }
  0x21   :  { %141 = vperm.xlu1 %1287, %v63_v24   ;;  %136 = vperm.xlu0 %1286, %v62_v25  }
  0x22   :  { %1217 = vmatmul.mubr.msk.bf16.gmra.mrb[12].mxu0 %vm190_vm0, %v1296_v26 }
  0x25   :  { %407 = vperm.xlu1 %1287, %v369_v27   ;;  %402 = vperm.xlu0 %1286, %v368_v28  }
  0x29   :  { %417 = vperm.xlu1 %1287, %v371_v29   ;;  %412 = vperm.xlu0 %1286, %v370_v30  }
  0x2d   :  { %427 = vperm.xlu1 %1287, %v373_v31   ;;  %422 = vperm.xlu0 %1286, %v372_v32  }
  0x31   :  { %437 = vperm.xlu1 %1287, %v375_v33   ;;  %432 = vperm.xlu0 %1286, %v374_v34  }
  0x32   :  { %14 = vsyncpa [#allocation4], 0  ;;  %v377_v35 = vld [vmem:[%s1871_s4 + $0x48] sm:$0xff]  ;;  %v376_v36 = vld [vmem:[%s1871_s4 + $0x40] sm:$0xff] }
  0x33   :  { %v379_v37 = vld [vmem:[%s1871_s4 + $0x58] sm:$0xff]  ;;  %v378_v38 = vld [vmem:[%s1871_s4 + $0x50] sm:$0xff]  ;;  %v381_v39 = vld [vmem:[%s1871_s4 + $0x68] sm:$0xff] }
  0x34   :  { %v380_v40 = vld [vmem:[%s1871_s4 + $0x60] sm:$0xff]  ;;  %v383_v41 = vld [vmem:[%s1871_s4 + $0x78] sm:$0xff]  ;;  %v382_v42 = vld [vmem:[%s1871_s4 + $0x70] sm:$0xff] }
  0x35   :  { %447 = vperm.xlu1 %1287, %v377_v35   ;;  %442 = vperm.xlu0 %1286, %v376_v36   ;;  %v385_v43 = vld [vmem:[%s1871_s4 + $0x88] sm:$0xff]  ;;  %v384_v44 = vld [vmem:[%s1871_s4 + $0x80] sm:$0xff]  ;;  %v387_v45 = vld [vmem:[%s1871_s4 + $0x98] sm:$0xff] }
  0x36   :  { %v386_v46 = vld [vmem:[%s1871_s4 + $0x90] sm:$0xff]  ;;  %v389_v47 = vld [vmem:[%s1871_s4 + $0xa8] sm:$0xff]  ;;  %v388_v48 = vld [vmem:[%s1871_s4 + $0xa0] sm:$0xff] }
  0x37   :  { %v391_v49 = vld [vmem:[%s1871_s4 + $0xb8] sm:$0xff]  ;;  %v390_v50 = vld [vmem:[%s1871_s4 + $0xb0] sm:$0xff]  ;;  %v393_v51 = vld [vmem:[%s1871_s4 + $0xc8] sm:$0xff] }
  0x38   :  { %v392_v52 = vld [vmem:[%s1871_s4 + $0xc0] sm:$0xff]  ;;  %v395_v53 = vld [vmem:[%s1871_s4 + $0xd8] sm:$0xff]  ;;  %v394_v54 = vld [vmem:[%s1871_s4 + $0xd0] sm:$0xff] }
  0x39   :  { %457 = vperm.xlu1 %1287, %v379_v37   ;;  %452 = vperm.xlu0 %1286, %v378_v38   ;;  %v849_v55 = vld [vmem:[%s1872_s5] sm:$0xff]  ;;  %v851_v57 = vld [vmem:[%s1872_s5 + $0x10] sm:$0xff]  ;;  %v850_v58 = vld [vmem:[%s1872_s5 + $0x8] sm:$0xff] }
  0x3a   :  { %v396_v56 = vld [vmem:[%s1871_s4 + $0xe0] sm:$0xff]  ;;  %v852_v60 = vld [vmem:[%s1872_s5 + $0x18] sm:$0xff]  ;;  %v855_v61 = vld [vmem:[%s1872_s5 + $0x30] sm:$0xff] }
  0x3b   :  { %v853_v59 = vld [vmem:[%s1872_s5 + $0x20] sm:$0xff]  ;;  %v854_v62 = vld [vmem:[%s1872_s5 + $0x28] sm:$0xff]  ;;  %v856_v0 = vld [vmem:[%s1872_s5 + $0x38] sm:$0xff] }
  0x3c   :  { %v857_v63 = vld [vmem:[%s1872_s5 + $0x40] sm:$0xff]  ;;  %v859_v1 = vld [vmem:[%s1872_s5 + $0x50] sm:$0xff]  ;;  %v858_v2 = vld [vmem:[%s1872_s5 + $0x48] sm:$0xff] }
  0x3d   :  { %467 = vperm.xlu1 %1287, %v381_v39   ;;  %462 = vperm.xlu0 %1286, %v380_v40   ;;  %v861_v3 = vld [vmem:[%s1872_s5 + $0x60] sm:$0xff]  ;;  %v860_v4 = vld [vmem:[%s1872_s5 + $0x58] sm:$0xff]  ;;  %v863_v5 = vld [vmem:[%s1872_s5 + $0x70] sm:$0xff] }
  0x3e   :  { %v862_v6 = vld [vmem:[%s1872_s5 + $0x68] sm:$0xff]  ;;  %v865_v7 = vld [vmem:[%s1872_s5 + $0x80] sm:$0xff]  ;;  %v864_v8 = vld [vmem:[%s1872_s5 + $0x78] sm:$0xff] }
  0x3f   :  { %v867_v9 = vld [vmem:[%s1872_s5 + $0x90] sm:$0xff]  ;;  %v866_v10 = vld [vmem:[%s1872_s5 + $0x88] sm:$0xff]  ;;  %v869_v11 = vld [vmem:[%s1872_s5 + $0xa0] sm:$0xff] }
  0x40   :  { %v868_v12 = vld [vmem:[%s1872_s5 + $0x98] sm:$0xff]  ;;  %v1297_v13 = vld [vmem:[%s1870_s3] sm:$0xff]   ;;  %v1298_v14 = vld [vmem:[%s1870_s3 + $0x30] sm:$0xff]  }
  0x41   :  { %477 = vperm.xlu1 %1287, %v383_v41   ;;  %472 = vperm.xlu0 %1286, %v382_v42   ;;  %v871_v15 = vld [vmem:[%s1872_s5 + $0xb0] sm:$0xff]  ;;  %v870_v16 = vld [vmem:[%s1872_s5 + $0xa8] sm:$0xff]  ;;  %v873_v17 = vld [vmem:[%s1872_s5 + $0xc0] sm:$0xff] }
  0x42   :  { %1236 = vmatprep.mubr.bf16.mxu0 %v1297_v13  ;;  %1248 = vmatprep.mubr.bf16.mxu1 %v1298_v14  ;;  %v872_v18 = vld [vmem:[%s1872_s5 + $0xb8] sm:$0xff]  ;;  %v875_v19 = vld [vmem:[%s1872_s5 + $0xd0] sm:$0xff]  ;;  %v874_v20 = vld [vmem:[%s1872_s5 + $0xc8] sm:$0xff] }
  0x43   :  { %v876_v21 = vld [vmem:[%s1872_s5 + $0xd8] sm:$0xff]  ;;  %v397_v22 = vld [vmem:[%s1871_s4 + $0xe8] sm:$0xff]  ;;  %v877_v23 = vld [vmem:[%s1872_s5 + $0xe0] sm:$0xff] }
  0x44   :  { %v398_v24 = vld [vmem:[%s1871_s4 + $0xf0] sm:$0xff]  ;;  %v878_v25 = vld [vmem:[%s1872_s5 + $0xe8] sm:$0xff]  ;;  %v399_v26 = vld [vmem:[%s1871_s4 + $0xf8] sm:$0xff] }
  0x45   :  { %487 = vperm.xlu1 %1287, %v385_v43   ;;  %482 = vperm.xlu0 %1286, %v384_v44   ;;  %v880_v27 = vld [vmem:[%s1872_s5 + $0xf8] sm:$0xff]  ;;  %v879_v28 = vld [vmem:[%s1872_s5 + $0xf0] sm:$0xff]  ;;  %v1110_v29 = vld [vmem:[#allocation2] sm:$0x1] }
  0x49   :  { %497 = vperm.xlu1 %1287, %v387_v45   ;;  %492 = vperm.xlu0 %1286, %v386_v46  }
  0x4d   :  { %507 = vperm.xlu1 %1287, %v389_v47   ;;  %502 = vperm.xlu0 %1286, %v388_v48  }
  0x51   :  { %517 = vperm.xlu1 %1287, %v391_v49   ;;  %512 = vperm.xlu0 %1286, %v390_v50  }
  0x55   :  { %527 = vperm.xlu1 %1287, %v393_v51   ;;  %522 = vperm.xlu0 %1286, %v392_v52  }
  0x59   :  { %537 = vperm.xlu1 %1287, %v395_v53   ;;  %532 = vperm.xlu0 %1286, %v394_v54  }
  0x5d   :  { %883 = vperm.xlu1 %1287, %v849_v55   ;;  %542 = vperm.xlu0 %1286, %v396_v56  }
  0x61   :  { %893 = vperm.xlu1 %1287, %v851_v57   ;;  %888 = vperm.xlu0 %1286, %v850_v58  }
  0x65   :  { %903 = vperm.xlu1 %1287, %v853_v59   ;;  %898 = vperm.xlu0 %1286, %v852_v60  }
  0x69   :  { %913 = vperm.xlu1 %1287, %v855_v61   ;;  %908 = vperm.xlu0 %1286, %v854_v62  }
  0x6d   :  { %923 = vperm.xlu1 %1287, %v857_v63   ;;  %918 = vperm.xlu0 %1286, %v856_v0  }
  0x71   :  { %933 = vperm.xlu1 %1287, %v859_v1   ;;  %928 = vperm.xlu0 %1286, %v858_v2  }
  0x75   :  { %943 = vperm.xlu1 %1287, %v861_v3   ;;  %938 = vperm.xlu0 %1286, %v860_v4  }
  0x79   :  { %953 = vperm.xlu1 %1287, %v863_v5   ;;  %948 = vperm.xlu0 %1286, %v862_v6  }
  0x7d   :  { %963 = vperm.xlu1 %1287, %v865_v7   ;;  %958 = vperm.xlu0 %1286, %v864_v8  }
  0x81   :  { %973 = vperm.xlu1 %1287, %v867_v9   ;;  %968 = vperm.xlu0 %1286, %v866_v10  }
  0x84   :  { %v67_v30 = vpop.permute.xlu0 %66  ;;  %v77_v31 = vpop.permute.xlu1 %76 }
  0x85   :  { %983 = vperm.xlu1 %1287, %v869_v11   ;;  %978 = vperm.xlu0 %1286, %v868_v12  }
  0x88   :  { %v72_v32 = vpop.permute.xlu0 %71  ;;  %v82_v33 = vpop.permute.xlu1 %81 }
  0x89   :  { %993 = vperm.xlu1 %1287, %v871_v15   ;;  %988 = vperm.xlu0 %1286, %v870_v16  }
  0x8c   :  { %v87_v34 = vpop.permute.xlu0 %86  ;;  %v92_v35 = vpop.permute.xlu1 %91 }
  0x8d   :  { %1003 = vperm.xlu1 %1287, %v873_v17   ;;  %998 = vperm.xlu0 %1286, %v872_v18  }
  0x90   :  { %v97_v36 = vpop.permute.xlu0 %96  ;;  %v102_v40 = vpop.permute.xlu1 %101 }
  0x91   :  { %1013 = vperm.xlu1 %1287, %v875_v19   ;;  %1008 = vperm.xlu0 %1286, %v874_v20  }
  0x94   :  { %v107_v48 = vpop.permute.xlu0 %106  ;;  %v112_v52 = vpop.permute.xlu1 %111 }
  0x95   :  { %1018 = vperm.xlu1 %1287, %v876_v21   ;;  %547 = vperm.xlu0 %1286, %v397_v22  }
  0x98   :  { %v117_v60 = vpop.permute.xlu0 %116  ;;  %v122_v1 = vpop.permute.xlu1 %121 }
  0x99   :  { %1023 = vperm.xlu1 %1287, %v877_v23   ;;  %552 = vperm.xlu0 %1286, %v398_v24  }
  0x9c   :  { %v127_v9 = vpop.permute.xlu0 %126  ;;  %v132_v13 = vpop.permute.xlu1 %131 }
  0x9d   :  { %1028 = vperm.xlu1 %1287, %v878_v25   ;;  %557 = vperm.xlu0 %1286, %v399_v26  }
  0xa0   :  { %v137_v21 = vpop.permute.xlu0 %136  ;;  %v142_v26 = vpop.permute.xlu1 %141 }
  0xa1   :  { %1038 = vperm.xlu1 %1287, %v880_v27   ;;  %1033 = vperm.xlu0 %1286, %v879_v28  }
  0xa5   :  { %1113 = vperm.xlu0 %1286, %v1110_v29  }
  0xdd   :  { %v1206_v37 = vpop.f32.mrb[0].mxu0 }
  0xde   :  { %v258_v38 = vadd.f32 %v1206_v37, %v77_v31  ;;  %v249_v39 = vpop.f32.mrb[1].mxu0 }
  0xdf   :  { %v1207_v41 = vpop.f32.mrb[2].mxu0  ;;  %v250_v42 = vadd.f32 %v249_v39, %v67_v30  ;;  %v1300_v39 = vld [vmem:[%s1870_s3 + $0x38] sm:$0xff]  }
  0xe0   :  { %v261_v43 = vadd.f32 %v1207_v41, %v82_v33  ;;  %v252_v44 = vpop.f32.mrb[3].mxu0  ;;  %v314_v45 = vmax.f32 %v258_v38, 0.0  ;;  %v1299_v38 = vld [vmem:[%s1870_s3 + $0x8] sm:$0xff]   ;;  %v1302_v41 = vld [vmem:[%s1870_s3 + $0x40] sm:$0xff]  }
  0xe1   :  { %v253_v47 = vadd.f32 %v252_v44, %v72_v32  ;;  %v312_v49 = vmax.f32 %v250_v42, 0.0  ;;  %v1303_v42 = vld [vmem:[%s1870_s3 + $0x18] sm:$0xff]   ;;  %v1305_v44 = vld [vmem:[%s1870_s3 + $0x20] sm:$0xff]  }
  0xe2   :  { %v315_v46 = vmax.f32 %v261_v43, 0.0  ;;  %v1304_v43 = vld [vmem:[%s1870_s3 + $0x48] sm:$0xff]  }
  0xe3   :  { %v313_v51 = vmax.f32 %v253_v47, 0.0  ;;  %v1308_v47 = vld [vmem:[%s1870_s3 + $0x58] sm:$0xff]  }
  0xe4   :  { %v361_v50 = vpack.c.bf16 %v315_v46, %v314_v45  ;;  %v1306_v45 = vld [vmem:[%s1870_s3 + $0x50] sm:$0xff]   ;;  %v1307_v46 = vld [vmem:[%s1870_s3 + $0x28] sm:$0xff]  }
  0xe5   :  { %v1210_v53 = vpop.f32.mrb[4].mxu0  ;;  %v360_v54 = vpack.c.bf16 %v313_v51, %v312_v49  ;;  %v1310_v49 = vld [vmem:[%s1870_s3 + $0x68] sm:$0xff]   ;;  %v1312_v51 = vld [vmem:[%s1870_s3 + $0x78] sm:$0xff]  }
  0xe6   :  { %v274_v55 = vadd.f32 %v1210_v53, %v97_v36  ;;  %v265_v56 = vpop.f32.mrb[5].mxu0  ;;  %v408_v53 = vpop.permute.xlu1 %407 }
  0xe7   :  { %v1211_v57 = vpop.f32.mrb[6].mxu0  ;;  %v266_v58 = vadd.f32 %v265_v56, %v87_v34  ;;  %1220 = vmatprep.subr.bf16.mxu0 %v360_v54  ;;  %1268 = vmatprep.subr.bf16.mxu1 %v360_v54 }
  0xe8   :  { %v277_v59 = vadd.f32 %v1211_v57, %v102_v40  ;;  %v268_v61 = vpop.f32.mrb[7].mxu0  ;;  %1221 = vmatpush3.bf16.msra.mxu0 %v360_v54  ;;  %1276 = vmatpush3.bf16.msra.mxu1 %v360_v54  ;;  %v318_v62 = vmax.f32 %v274_v55, 0.0  ;;  %v1301_v40 = vld [vmem:[%s1870_s3 + $0x10] sm:$0xff]  }
  0xe9   :  { %v269_v0 = vadd.f32 %v268_v61, %v92_v35  ;;  %1222 = vmatprep.subr.bf16.mxu0 %v361_v50  ;;  %1269 = vmatprep.subr.bf16.mxu1 %v361_v50  ;;  %v316_v2 = vmax.f32 %v266_v58, 0.0 }
  0xea   :  { %v319_v63 = vmax.f32 %v277_v59, 0.0  ;;  %v418_v55 = vpop.permute.xlu1 %417 }
  0xeb   :  { %v317_v4 = vmax.f32 %v269_v0, 0.0 }
  0xec   :  { %v363_v3 = vpack.c.bf16 %v319_v63, %v318_v62  ;;  %1223 = vmatpush3.bf16.msra.mxu0 %v361_v50  ;;  %1277 = vmatpush3.bf16.msra.mxu1 %v361_v50  ;;  %v1311_v50 = vld [vmem:[%s1870_s3 + $0x70] sm:$0xff]  }
  0xed   :  { %v1214_v5 = vpop.f32.mrb[8].mxu0  ;;  %v362_v6 = vpack.c.bf16 %v317_v4, %v316_v2 }
  0xee   :  { %v290_v7 = vadd.f32 %v1214_v5, %v117_v60  ;;  %v281_v8 = vpop.f32.mrb[9].mxu0  ;;  %v1707_v57 = vpop.permute.xlu1 %427 }
  0xef   :  { %v1215_v10 = vpop.f32.mrb[10].mxu0  ;;  %v282_v11 = vadd.f32 %v281_v8, %v107_v48  ;;  %1224 = vmatprep.subr.bf16.mxu0 %v362_v6  ;;  %1270 = vmatprep.subr.bf16.mxu1 %v362_v6  ;;  %v1309_v48 = vld [vmem:[%s1870_s3 + $0x60] sm:$0xff]   ;;  %s1338_s3 = smov [#allocation3]  }
  0xf0   :  { %v293_v12 = vadd.f32 %v1215_v10, %v122_v1  ;;  %v284_v14 = vpop.f32.mrb[11].mxu0  ;;  %1225 = vmatpush3.bf16.msra.mxu0 %v362_v6  ;;  %1278 = vmatpush3.bf16.msra.mxu1 %v362_v6  ;;  %v322_v15 = vmax.f32 %v290_v7, 0.0  ;;  %s1128_s22 = sshll.u32 %s1338_s3, 4  ;;  %s1129_s22 = int_to_ptr.vmem [resolvable:$true] %s1128_s22 }
  0xf1   :  { %v285_v17 = vadd.f32 %v284_v14, %v112_v52  ;;  %1226 = vmatprep.subr.bf16.mxu0 %v363_v3  ;;  %1271 = vmatprep.subr.bf16.mxu1 %v363_v3  ;;  %v320_v18 = vmax.f32 %v282_v11, 0.0  ;;  %v403_v52 = vpop.permute.xlu0 %402  ;;  %s1313_s4 = scalar_lea.vmem %s1129_s22, 16  ;;  %s1317_s5 = scalar_lea.vmem %s1129_s22, 32 }
  0xf2   :  { %v323_v16 = vmax.f32 %v293_v12, 0.0  ;;  %v1711_v59 = vpop.permute.xlu1 %437  ;;  %p1314_p0 = scmp.ne.s32.totalorder %s1129_s22, %s1313_s4  ;;  %p1318_p1 = scmp.lt.s32.totalorder %s1129_s22, %s1129_s22 }
  0xf3   :  { %v321_v20 = vmax.f32 %v285_v17, 0.0  ;;  %p1319_p2 = scmp.lt.s32.totalorder %s1317_s5, %s1313_s4 }
  0xf4   :  { %v365_v19 = vpack.c.bf16 %v323_v16, %v322_v15  ;;  %1227 = vmatpush3.bf16.msra.mxu0 %v363_v3  ;;  %1279 = vmatpush3.bf16.msra.mxu1 %v363_v3 }
  0xf5   :  { %v1218_v22 = vpop.f32.mrb[12].mxu0  ;;  %v364_v23 = vpack.c.bf16 %v321_v20, %v320_v18  ;;  %v413_v54 = vpop.permute.xlu0 %412  ;;  %p1320_p3 = por %p1319_p2, %p1318_p1 }
  0xf6   :  { %v306_v24 = vadd.f32 %v1218_v22, %v137_v21  ;;  %v297_v25 = vpop.f32.mrb[13].mxu0  ;;  %v1715_v61 = vpop.permute.xlu1 %447 }
  0xf7   :  { %v1219_v27 = vpop.f32.mrb[14].mxu0  ;;  %v298_v28 = vadd.f32 %v297_v25, %v127_v9  ;;  %1228 = vmatprep.subr.bf16.mxu0 %v364_v23  ;;  %1272 = vmatprep.subr.bf16.mxu1 %v364_v23  ;;  %p1321_p4 = pnand %p1320_p3, %p1314_p0 }
  0xf8   :  { %v309_v29 = vadd.f32 %v1219_v27, %v142_v26  ;;  %v300_v30 = vpop.f32.mrb[15].mxu0  ;;  %1229 = vmatpush3.bf16.msra.mxu0 %v364_v23  ;;  %1280 = vmatpush3.bf16.msra.mxu1 %v364_v23  ;;  %v326_v31 = vmax.f32 %v306_v24, 0.0 }
  0xf9   :  { %v301_v33 = vadd.f32 %v300_v30, %v132_v13  ;;  %1230 = vmatprep.subr.bf16.mxu0 %v365_v19  ;;  %1273 = vmatprep.subr.bf16.mxu1 %v365_v19  ;;  %v324_v34 = vmax.f32 %v298_v28, 0.0  ;;  %v1705_v56 = vpop.permute.xlu0 %422 }
  0xfa   :  { %v327_v32 = vmax.f32 %v309_v29, 0.0  ;;  %v1719_v63 = vpop.permute.xlu1 %457 }
  0xfb   :  { %v325_v36 = vmax.f32 %v301_v33, 0.0 }
  0xfc   :  { %v367_v35 = vpack.c.bf16 %v327_v32, %v326_v31  ;;  %1231 = vmatpush3.bf16.msra.mxu0 %v365_v19  ;;  %1281 = vmatpush3.bf16.msra.mxu1 %v365_v19 }
  0xfd   :  { %v366_v37 = vpack.c.bf16 %v325_v36, %v324_v34  ;;  %v1709_v58 = vpop.permute.xlu0 %432 }
  0xfe   :  { %v1723_v1 = vpop.permute.xlu1 %467 }
  0xff   :  { %1232 = vmatprep.subr.bf16.mxu0 %v366_v37  ;;  %1274 = vmatprep.subr.bf16.mxu1 %v366_v37 }
 0x100   :  { %1233 = vmatpush3.bf16.msra.mxu0 %v366_v37  ;;  %1282 = vmatpush3.bf16.msra.mxu1 %v366_v37 }
 0x101   :  { %1234 = vmatprep.subr.bf16.mxu0 %v367_v35  ;;  %1275 = vmatprep.subr.bf16.mxu1 %v367_v35  ;;  %v1713_v60 = vpop.permute.xlu0 %442 }
 0x102   :  { %v1727_v3 = vpop.permute.xlu1 %477 }
 0x104   :  { %1235 = vmatpush3.bf16.msra.mxu0 %v367_v35  ;;  %1283 = vmatpush3.bf16.msra.mxu1 %v367_v35 }
 0x105   :  { %v1717_v62 = vpop.permute.xlu0 %452 }
 0x106   :  { %v1731_v5 = vpop.permute.xlu1 %487 }
 0x107   :  { %1237 = vmatmul.mubr.bf16.vlgmr.msra.gmra.mrb[16].mxu0 %v1299_v38  ;;  %1249 = vmatmul.mubr.bf16.vlgmr.msra.gmra.mrb[0].mxu1 %v1300_v39 }
 0x108   :  { %1240 = vmatprep.mubr.bf16.mxu0 %v1301_v40  ;;  %1252 = vmatprep.mubr.bf16.mxu1 %v1302_v41 }
 0x109   :  { %v1721_v0 = vpop.permute.xlu0 %462 }
 0x10a   :  { %v1735_v7 = vpop.permute.xlu1 %497 }
 0x10d   :  { %v1725_v2 = vpop.permute.xlu0 %472 }
 0x10e   :  { %v1739_v9 = vpop.permute.xlu1 %507 }
 0x10f   :  { %1241 = vmatmul.mubr.bf16.gmra.mrb[20].mxu0 %v1303_v42  ;;  %1253 = vmatmul.mubr.bf16.gmra.mrb[4].mxu1 %v1304_v43 }
 0x110   :  { %1244 = vmatprep.mubr.bf16.mxu0 %v1305_v44  ;;  %1256 = vmatprep.mubr.bf16.mxu1 %v1306_v45 }
 0x111   :  { %v1729_v4 = vpop.permute.xlu0 %482 }
 0x112   :  { %v1743_v11 = vpop.permute.xlu1 %517 }
 0x115   :  { %v1733_v6 = vpop.permute.xlu0 %492 }
 0x116   :  { %v1747_v13 = vpop.permute.xlu1 %527 }
 0x117   :  { %1245 = vmatmul.mubr.bf16.gmra.mrb[24].mxu0 %v1307_v46  ;;  %1257 = vmatmul.mubr.bf16.gmra.mrb[8].mxu1 %v1308_v47 }
 0x118   :  { %1260 = vmatprep.mubr.bf16.mxu1 %v1309_v48 }
 0x119   :  { %v1737_v8 = vpop.permute.xlu0 %502 }
 0x11a   :  { %v1751_v15 = vpop.permute.xlu1 %537 }
 0x11d   :  { %v1741_v10 = vpop.permute.xlu0 %512 }
 0x11e   :  { %v884_v17 = vpop.permute.xlu1 %883 }
 0x11f   :  { %1261 = vmatmul.mubr.bf16.gmra.mrb[12].mxu1 %v1310_v49 }
 0x120   :  { %1264 = vmatprep.mubr.bf16.mxu1 %v1311_v50 }
 0x121   :  { %v1745_v12 = vpop.permute.xlu0 %522 }
 0x122   :  { %v894_v19 = vpop.permute.xlu1 %893 }
 0x125   :  { %v1749_v14 = vpop.permute.xlu0 %532 }
 0x126   :  { %v904_v21 = vpop.permute.xlu1 %903 }
 0x127   :  { %1265 = vmatmul.mubr.bf16.gmra.mrb[16].mxu1 %v1312_v51 }
 0x129   :  { %v1753_v16 = vpop.permute.xlu0 %542 }
 0x12a   :  { %1875 = vst [vmem:[#allocation6_spill] sm:$0xff] %v1753_v16  ;;  %v914_v23 = vpop.permute.xlu1 %913 }
 0x12d   :  { %v889_v18 = vpop.permute.xlu0 %888 }
 0x12e   :  { %v1757_v25 = vpop.permute.xlu1 %923 }
 0x131   :  { %v899_v20 = vpop.permute.xlu0 %898 }
 0x132   :  { %v1761_v27 = vpop.permute.xlu1 %933 }
 0x135   :  { %v909_v22 = vpop.permute.xlu0 %908 }
 0x136   :  { %v1765_v29 = vpop.permute.xlu1 %943 }
 0x139   :  { %v1755_v24 = vpop.permute.xlu0 %918 }
 0x13a   :  { %v1775_v46 = vpop.permute.xlu1 %953 }
 0x13d   :  { %v1759_v26 = vpop.permute.xlu0 %928 }
 0x13e   :  { %v1791_v16 = vpop.permute.xlu1 %963 }
 0x141   :  { %v1763_v28 = vpop.permute.xlu0 %938 }
 0x145   :  { %v1767_v30 = vpop.permute.xlu0 %948 }
 0x149   :  { %v1777_v47 = vpop.permute.xlu0 %958 }
 0x1da   :  { %v1238_v31 = vpop.f32.mrb[16].mxu0  ;;  %v1769_v32 = vpop.f32.mrb[0].mxu1 }
 0x1db   :  { %v690_v33 = vpop.f32.mrb[17].mxu0  ;;  %v1771_v34 = vpop.f32.mrb[1].mxu1  ;;  %v699_v35 = vadd.f32 %v1238_v31, %v413_v54 }
 0x1dc   :  { %v691_v36 = vadd.f32 %v690_v33, %v403_v52  ;;  %v1239_v37 = vpop.f32.mrb[18].mxu0  ;;  %v1773_v38 = vpop.f32.mrb[2].mxu1 }
 0x1dd   :  { %v702_v39 = vadd.f32 %v1239_v37, %v418_v55  ;;  %v693_v40 = vpop.f32.mrb[19].mxu0  ;;  %v741_v41 = vpop.f32.mrb[3].mxu1  ;;  %v819_v44 = vmax.f32 %v699_v35, 0.0 }
 0x1de   :  { %v817_v42 = vmax.f32 %v691_v36, 0.0  ;;  %v694_v43 = vadd.f32 %v693_v40, %v408_v53 }
 0x1df   :  { %v820_v48 = vmax.f32 %v702_v39, 0.0  ;;  %v1043_v55 = vmul.f32 %v894_v19, %v819_v44 }
 0x1e0   :  { %v818_v45 = vmax.f32 %v694_v43, 0.0  ;;  %v1041_v49 = vmul.f32 %v884_v17, %v817_v42 }
 0x1e1   :  { %v1044_v40 = vmul.f32 %v899_v20, %v820_v48 }
 0x1e2   :  { %v1042_v50 = vmul.f32 %v889_v18, %v818_v45  ;;  %v1242_v51 = vpop.f32.mrb[20].mxu0  ;;  %v1779_v54 = vpop.f32.mrb[4].mxu1 }
 0x1e3   :  { %v706_v52 = vpop.f32.mrb[21].mxu0  ;;  %v1781_v31 = vpop.f32.mrb[5].mxu1  ;;  %v715_v36 = vadd.f32 %v1242_v51, %v1709_v58 }
 0x1e4   :  { %v1073_v33 = vadd.f32 %v1042_v50, %v1041_v49  ;;  %v707_v53 = vadd.f32 %v706_v52, %v1705_v56  ;;  %v1243_v35 = vpop.f32.mrb[22].mxu0  ;;  %v1785_v37 = vpop.f32.mrb[6].mxu1 }
 0x1e5   :  { %v709_v43 = vpop.f32.mrb[23].mxu0  ;;  %v1787_v39 = vpop.f32.mrb[7].mxu1  ;;  %v718_v42 = vadd.f32 %v1243_v35, %v1711_v59  ;;  %v823_v19 = vmax.f32 %v715_v36, 0.0 }
 0x1e6   :  { %v1074_v17 = vadd.f32 %v1073_v33, %v1043_v55  ;;  %v821_v18 = vmax.f32 %v707_v53, 0.0  ;;  %v710_v45 = vadd.f32 %v709_v43, %v1707_v57  ;;  %v1793_v56 = vpop.permute.xlu0 %968 }
 0x1e7   :  { %v824_v51 = vmax.f32 %v718_v42, 0.0  ;;  %v1047_v59 = vmul.f32 %v914_v23, %v823_v19 }
 0x1e8   :  { %v1045_v44 = vmul.f32 %v904_v21, %v821_v18  ;;  %v1075_v58 = vadd.f32 %v1074_v17, %v1044_v40  ;;  %v822_v49 = vmax.f32 %v710_v45, 0.0  ;;  %v974_v17 = vpop.permute.xlu1 %973 }
 0x1ea   :  { %v1076_v50 = vadd.f32 %v1075_v58, %v1045_v44  ;;  %v1046_v20 = vmul.f32 %v909_v22, %v822_v49  ;;  %v1246_v48 = vpop.f32.mrb[24].mxu0  ;;  %v1795_v52 = vpop.f32.mrb[8].mxu1  ;;  %v1048_v22 = vmul.f32 %v1755_v24, %v824_v51  ;;  %v742_v24 = vadd.f32 %v741_v41, %v1723_v1 }
 0x1eb   :  { %v722_v55 = vpop.f32.mrb[25].mxu0  ;;  %v1797_v33 = vpop.f32.mrb[9].mxu1  ;;  %v731_v21 = vadd.f32 %v1246_v48, %v1717_v62 }
 0x1ec   :  { %v1077_v53 = vadd.f32 %v1076_v50, %v1046_v20  ;;  %v723_v57 = vadd.f32 %v722_v55, %v1713_v60  ;;  %v1247_v35 = vpop.f32.mrb[26].mxu0  ;;  %v1800_v36 = vpop.f32.mrb[10].mxu1  ;;  %v739_v60 = vadd.f32 %v1771_v34, %v1721_v0 }
 0x1ed   :  { %v725_v40 = vpop.f32.mrb[27].mxu0  ;;  %v773_v43 = vpop.f32.mrb[11].mxu1  ;;  %v734_v45 = vadd.f32 %v1247_v35, %v1719_v63  ;;  %v827_v58 = vmax.f32 %v731_v21, 0.0  ;;  %v830_v35 = vmax.f32 %v742_v24, 0.0 }
 0x1ee   :  { %v1078_v18 = vadd.f32 %v1077_v53, %v1047_v59  ;;  %v825_v42 = vmax.f32 %v723_v57, 0.0  ;;  %v726_v44 = vadd.f32 %v725_v40, %v1715_v61  ;;  %v979_v62 = vpop.permute.xlu0 %978  ;;  %v984_v55 = vpop.permute.xlu1 %983  ;;  %v829_v59 = vmax.f32 %v739_v60, 0.0 }
 0x1ef   :  { %v828_v51 = vmax.f32 %v734_v45, 0.0  ;;  %v1051_v0 = vmul.f32 %v1761_v27, %v827_v58  ;;  %v750_v57 = vadd.f32 %v1773_v38, %v1727_v3  ;;  %v758_v3 = vadd.f32 %v1787_v39, %v1731_v5 }
 0x1f0   :  { %v1049_v23 = vmul.f32 %v1757_v25, %v825_v42  ;;  %v1079_v19 = vadd.f32 %v1078_v18, %v1048_v22  ;;  %v826_v49 = vmax.f32 %v726_v44, 0.0  ;;  %v747_v25 = vadd.f32 %v1769_v32, %v1725_v2 }
 0x1f1   :  { %v1052_v1 = vmul.f32 %v1763_v28, %v828_v51  ;;  %v1053_v40 = vmul.f32 %v1765_v29, %v829_v59  ;;  %v755_v22 = vadd.f32 %v1781_v31, %v1729_v4  ;;  %v832_v27 = vmax.f32 %v750_v57, 0.0 }
 0x1f2   :  { %v1080_v50 = vadd.f32 %v1079_v19, %v1049_v23  ;;  %v1809_v20 = vpop.f32.mrb[12].mxu1  ;;  %v1050_v48 = vmul.f32 %v1759_v26, %v826_v49  ;;  %v989_v26 = vpop.permute.xlu0 %988  ;;  %v831_v21 = vmax.f32 %v747_v25, 0.0  ;;  %v1054_v42 = vmul.f32 %v1767_v30, %v830_v35 }
 0x1f3   :  { %v786_v63 = vpop.f32.mrb[13].mxu1  ;;  %v994_v32 = vpop.permute.xlu1 %993  ;;  %v763_v29 = vadd.f32 %v1779_v54, %v1733_v6  ;;  %v833_v4 = vmax.f32 %v755_v22, 0.0  ;;  %v1056_v60 = vmul.f32 %v1777_v47, %v832_v27  ;;  %v766_v30 = vadd.f32 %v1785_v37, %v1735_v7 }
 0x1f4   :  { %v1813_v61 = vpop.f32.mrb[14].mxu1  ;;  %v1081_v34 = vadd.f32 %v1080_v50, %v1050_v48  ;;  %v1055_v44 = vmul.f32 %v1775_v46, %v831_v21  ;;  %v834_v58 = vmax.f32 %v758_v3, 0.0  ;;  %v771_v46 = vadd.f32 %v1797_v33, %v1737_v8 }
 0x1f5   :  { %v789_v53 = vpop.f32.mrb[15].mxu1  ;;  %v835_v49 = vmax.f32 %v763_v29, 0.0  ;;  %v1057_v50 = vmul.f32 %v1791_v16, %v833_v4  ;;  %v836_v6 = vmax.f32 %v766_v30, 0.0  ;;  %v774_v51 = vadd.f32 %v773_v43, %v1739_v9 }
 0x1f6   :  { %v1082_v41 = vadd.f32 %v1081_v34, %v1051_v0  ;;  %v999_v19 = vpop.permute.xlu0 %998  ;;  %v1058_v54 = vmul.f32 %v1793_v56, %v834_v58  ;;  %v779_v7 = vadd.f32 %v1795_v52, %v1741_v10  ;;  %v837_v37 = vmax.f32 %v771_v46, 0.0 }
 0x1f7   :  { %v1004_v39 = vpop.permute.xlu1 %1003  ;;  %v1059_v25 = vmul.f32 %v974_v17, %v835_v49  ;;  %v1060_v34 = vmul.f32 %v979_v62, %v836_v6  ;;  %v782_v16 = vadd.f32 %v1800_v36, %v1743_v11  ;;  %v838_v8 = vmax.f32 %v774_v51, 0.0 }
 0x1f8   :  { %v1083_v2 = vadd.f32 %v1082_v41, %v1052_v1  ;;  %v839_v57 = vmax.f32 %v779_v7, 0.0  ;;  %v1061_v35 = vmul.f32 %v984_v55, %v837_v37  ;;  %v787_v9 = vadd.f32 %v786_v63, %v1745_v12 }
 0x1f9   :  { %v840_v1 = vmax.f32 %v782_v16, 0.0  ;;  %v1062_v17 = vmul.f32 %v989_v26, %v838_v8  ;;  %v790_v10 = vadd.f32 %v789_v53, %v1747_v13  ;;  %v795_v62 = vadd.f32 %v1809_v20, %v1749_v14 }
 0x1fa   :  { %v1824_v18 = vpop.f32.mrb[16].mxu1  ;;  %v1084_v38 = vadd.f32 %v1083_v2, %v1053_v40  ;;  %v1009_v47 = vpop.permute.xlu0 %1008  ;;  %v1063_v21 = vmul.f32 %v994_v32, %v839_v57  ;;  %v841_v11 = vmax.f32 %v787_v9, 0.0  ;;  %v798_v55 = vadd.f32 %v1813_v61, %v1751_v15 }
 0x1fb   :  { %v802_v28 = vpop.f32.mrb[17].mxu1  ;;  %v1014_v0 = vpop.permute.xlu1 %1013  ;;  %v1064_v36 = vmul.f32 %v999_v19, %v840_v1  ;;  %v842_v2 = vmax.f32 %v790_v10, 0.0  ;;  %v843_v63 = vmax.f32 %v795_v62, 0.0  ;;  %v1116_v51 = vlaneseq }
 0x1fc   :  { %v1829_v45 = vpop.f32.mrb[18].mxu1  ;;  %v1085_v31 = vadd.f32 %v1084_v38, %v1054_v42  ;;  %v1065_v27 = vmul.f32 %v1004_v39, %v841_v11  ;;  %v1876_v42 = vld [vmem:[#allocation6_spill] sm:$0xff]  ;;  %v844_v32 = vmax.f32 %v798_v55, 0.0 }
 0x1fd   :  { %v805_v23 = vpop.f32.mrb[19].mxu1  ;;  %v803_v3 = vadd.f32 %v802_v28, %v1876_v42  ;;  %v1066_v38 = vmul.f32 %v1009_v47, %v842_v2  ;;  %v1067_v29 = vmul.f32 %v1014_v0, %v843_v63 }
 0x1fe   :  { %v1086_v5 = vadd.f32 %v1085_v31, %v1055_v44  ;;  %v548_v43 = vpop.permute.xlu0 %547 }
 0x1ff   :  { %v1019_v52 = vpop.permute.xlu1 %1018  ;;  %v806_v44 = vadd.f32 %v805_v23, %v548_v43  ;;  %v845_v4 = vmax.f32 %v803_v3, 0.0 }
 0x200   :  { %v1087_v24 = vadd.f32 %v1086_v5, %v1056_v60  ;;  %v1068_v19 = vmul.f32 %v1019_v52, %v844_v32 }
 0x201   :  { %v846_v60 = vmax.f32 %v806_v44, 0.0 }
 0x202   :  { %v1088_v48 = vadd.f32 %v1087_v24, %v1057_v50  ;;  %v553_v12 = vpop.permute.xlu0 %552 }
 0x203   :  { %v1024_v13 = vpop.permute.xlu1 %1023  ;;  %v811_v20 = vadd.f32 %v1824_v18, %v553_v12 }
 0x204   :  { %v1089_v59 = vadd.f32 %v1088_v48, %v1058_v54  ;;  %v1069_v5 = vmul.f32 %v1024_v13, %v845_v4 }
 0x205   :  { %v847_v58 = vmax.f32 %v811_v20, 0.0 }
 0x206   :  { %v1090_v33 = vadd.f32 %v1089_v59, %v1059_v25  ;;  %v558_v31 = vpop.permute.xlu0 %557  ;;  %v1117_v25 = vshrl.u32 %v1116_v51, 7 }
 0x207   :  { %v814_v61 = vadd.f32 %v1829_v45, %v558_v31  ;;  %v1029_v30 = vpop.permute.xlu1 %1028 }
 0x208   :  { %v1091_v56 = vadd.f32 %v1090_v33, %v1060_v34  ;;  %v1070_v50 = vmul.f32 %v1029_v30, %v846_v60  ;;  %v1118_v37 = vsub.s32 0, %v1117_v25 }
 0x209   :  { %v848_v49 = vmax.f32 %v814_v61, 0.0 }
 0x20a   :  { %v1092_v41 = vadd.f32 %v1091_v56, %v1061_v35  ;;  %v1034_v46 = vpop.permute.xlu0 %1033 }
 0x20b   :  { %v1071_v23 = vmul.f32 %v1034_v46, %v847_v58  ;;  %v1039_v6 = vpop.permute.xlu1 %1038 }
 0x20c   :  { %v1093_v40 = vadd.f32 %v1092_v41, %v1062_v17  ;;  %v1072_v54 = vmul.f32 %v1039_v6, %v848_v49 }
 0x20e   :  { %v1094_v22 = vadd.f32 %v1093_v40, %v1063_v21  ;;  %v1114_v0 = vpop.permute.xlu0 %1113 }
 0x20f   :  { %v1119_v16 = vrot.slane %v1114_v0, %v1118_v37 }
 0x210   :  { %v1095_v26 = vadd.f32 %v1094_v22, %v1064_v36 }
 0x212   :  { %v1096_v53 = vadd.f32 %v1095_v26, %v1065_v27 }
 0x214   :  { %v1097_v14 = vadd.f32 %v1096_v53, %v1066_v38 }
 0x216   :  { %v1098_v15 = vadd.f32 %v1097_v14, %v1067_v29 }
 0x218   :  { %v1099_v28 = vadd.f32 %v1098_v15, %v1068_v19 }
 0x21a   :  { %v1100_v39 = vadd.f32 %v1099_v28, %v1069_v5 }
 0x21c   :  { %v1101_v24 = vadd.f32 %v1100_v39, %v1070_v50 }
 0x21e   :  { %v1102_v18 = vadd.f32 %v1101_v24, %v1071_v23 }
 0x220   :  { %v1103_v48 = vadd.f32 %v1102_v18, %v1072_v54 }
 0x222   :  { %v1104_v47 = vrot.slane %v1103_v48, 4 }
 0x224   :  { %v1105_v7 = vadd.f32 %v1104_v47, %v1103_v48 }
 0x226   :  { %v1106_v45 = vrot.slane %v1105_v7, 2 }
 0x228   :  { %v1107_v59 = vadd.f32 %v1106_v45, %v1105_v7 }
 0x22a   :  { %v1108_v34 = vrot.slane %v1107_v59, 1 }
 0x22c   :  { %v1109_v8 = vadd.f32 %v1108_v34, %v1107_v59 }
 0x22e   :  { %v1120_v33 = vadd.f32 %v1119_v16, %v1109_v8 }
 0x230   :  { %1121 = vst [vmem:[#allocation3] sm:$0x1] %v1120_v33 }
 0x231   :  { %1324 = shalt.err (!%p1321_p4)
}
 0x232   :  { %s1325_s25 = scalar_lea.hbm %s1874_s7, 16 }
 0x233   :  { %p1326_p5 = scmp.ne.s32.totalorder %s1874_s7, %s1325_s25  ;;  %p1329_p6 = scmp.lt.u32.totalorder %s1325_s25, %s1874_s7 }
 0x235   :  { %p1331_p7 = pnand %p1329_p6, %p1326_p5 }
 0x237   :  { %1334 = shalt.err (!%p1331_p7)
}
 0x238   :  { %1131 = dma.vmem_to_hbm [thread:$0]  %s1129_s22, 16, %s1874_s7, [#allocation4]  }
 0x239   :  { %1335 = dma.done.wait [#allocation4], 16  }
 0x23a   :  { %1336 = vsyncadd [#allocation4], 4294967280 }
 0x23b   :  { %1135 = vsyncpa [#allocation4], 1 }

</bundles_post_ra>
